<compile_context>
chip_gen: v6e
topology: v6e:2x2x1
jax: 0.10.0
libtpu: 0.0.40
codegen_flags: <defaults>
</compile_context>

<pallas_src>
import jax
import jax.numpy as jnp
from jax import lax
from jax.experimental import pallas as pl
from jax.experimental.pallas import tpu as pltpu


def _mha_kernel(x_ref, wq_ref, wk_ref, wv_ref, wo_ref, bo_ref, o_ref, acc_ref):
    # x_ref:  (Bb, T, d_in)      block of batch elements (same block for all h)
    # wq/wk/wv_ref: (1, d_in, hd) this head's pre-transposed projection weights
    # wo_ref: (1, hd, d_out)      this head's slice of out_proj.weight.T
    # bo_ref: (1, d_out)          out_proj bias
    # o_ref:  (Bb, T, d_out)      output block (resident across the head axis)
    # acc_ref:(Bb, T, d_out) f32  VMEM accumulator for the out-projection sum
    h = pl.program_id(1)

    Bb, T, d_in = x_ref.shape
    hd = wq_ref.shape[-1]
    d_out = wo_ref.shape[-1]

    x2 = x_ref[...].reshape(Bb * T, d_in)

    # Per-head projections; W_query is already scaled by 1/sqrt(head_dim) and
    # all weights are already transposed to (d_in, head_dim) in the wrapper.
    q = jnp.dot(x2, wq_ref[0], preferred_element_type=jnp.float32).reshape(Bb, T, hd)
    k = jnp.dot(x2, wk_ref[0], preferred_element_type=jnp.float32).reshape(Bb, T, hd)
    v = jnp.dot(x2, wv_ref[0], preferred_element_type=jnp.float32).reshape(Bb, T, hd)

    # Scores with contraction on the last axis — no explicit transpose of k.
    s = jnp.einsum('bqd,bkd->bqk', q, k, preferred_element_type=jnp.float32)

    # Causal mask (col > row masked), matching triu(ones, diagonal=1).
    row = lax.broadcasted_iota(jnp.int32, (Bb, T, T), 1)
    col = lax.broadcasted_iota(jnp.int32, (Bb, T, T), 2)
    s = jnp.where(col <= row, s, -jnp.inf)

    # Numerically stable softmax along keys; divide on the EUP via reciprocal.
    m = jnp.max(s, axis=-1, keepdims=True)
    p = jnp.exp(s - m)
    denom = jnp.sum(p, axis=-1, keepdims=True)
    w = p * pl.reciprocal(denom, approx=True)

    ctx = jnp.einsum('bqk,bkd->bqd', w, v, preferred_element_type=jnp.float32)

    # This head's contribution to the output projection:
    #   out = sum_h ctx_h @ W_o.T[h*hd:(h+1)*hd, :] + b_o
    part = jnp.dot(ctx.reshape(Bb * T, hd), wo_ref[0],
                   preferred_element_type=jnp.float32).reshape(Bb, T, d_out)

    @pl.when(h == 0)
    def _():
        acc_ref[...] = jnp.zeros_like(acc_ref)

    acc_ref[...] += part

    @pl.when(h == pl.num_programs(1) - 1)
    def _():
        o_ref[...] = (acc_ref[...] + bo_ref[...]).astype(o_ref.dtype)


def mha_forward(x, wq, wk, wv, wo, bo, *, num_heads, block_b=None):
    B, T, d_in = x.shape
    d_out = wq.shape[0]
    head_dim = d_out // num_heads
    assert head_dim * num_heads == d_out

    dt = x.dtype
    scale = 1.0 / (head_dim ** 0.5)

    # One-time wrapper-side layout work (XLA, outside the kernel):
    #  * transpose nn.Linear weights to (in, out),
    #  * fold the softmax scale into W_query,
    #  * split per head so each grid step gets a contiguous (d_in, hd) slab.
    wq_h = (wq.T * scale).reshape(d_in, num_heads, head_dim).transpose(1, 0, 2)
    wk_h = wk.T.reshape(d_in, num_heads, head_dim).transpose(1, 0, 2)
    wv_h = wv.T.reshape(d_in, num_heads, head_dim).transpose(1, 0, 2)
    wo_h = wo.T.reshape(num_heads, head_dim, d_out)          # (H, hd, d_out)
    bo2d = bo.reshape(1, d_out).astype(jnp.float32)          # added to f32 acc

    wq_h = wq_h.astype(dt)
    wk_h = wk_h.astype(dt)
    wv_h = wv_h.astype(dt)
    wo_h = wo_h.astype(dt)

    # Pack several batch elements per grid step so the MXU M-dim (block_b*T)
    # is reasonably fat even for short sequences.
    if block_b is None:
        block_b = max(1, min(B, pl.cdiv(256, T)))
        while B % block_b:
            block_b -= 1
    nb = B // block_b

    grid_spec = pltpu.PrefetchScalarGridSpec(
        num_scalar_prefetch=0,
        grid=(nb, num_heads),                                 # heads = reduction axis
        in_specs=[
            pl.BlockSpec((block_b, T, d_in), lambda b, h: (b, 0, 0)),     # x
            pl.BlockSpec((1, d_in, head_dim), lambda b, h: (h, 0, 0)),    # W_q (per head)
            pl.BlockSpec((1, d_in, head_dim), lambda b, h: (h, 0, 0)),    # W_k
            pl.BlockSpec((1, d_in, head_dim), lambda b, h: (h, 0, 0)),    # W_v
            pl.BlockSpec((1, head_dim, d_out), lambda b, h: (h, 0, 0)),   # W_o slice
            pl.BlockSpec((1, d_out), lambda b, h: (0, 0)),                # bias
        ],
        out_specs=pl.BlockSpec((block_b, T, d_out), lambda b, h: (b, 0, 0)),
        scratch_shapes=[pltpu.VMEM((block_b, T, d_out), jnp.float32)],
    )

    return pl.pallas_call(
        _mha_kernel,
        out_shape=jax.ShapeDtypeStruct((B, T, d_out), x.dtype),
        grid_spec=grid_spec,
        compiler_params=pltpu.CompilerParams(
            dimension_semantics=("parallel", "arbitrary")),
    )(x, wq_h, wk_h, wv_h, wo_h, bo2d)


def mha_reference(x, wq, wk, wv, wo, bo, *, num_heads):
    """Pure-JAX reference mirroring the PyTorch forward (eval mode)."""
    B, T, d_in = x.shape
    d_out = wq.shape[0]
    hd = d_out // num_heads
    q = x @ wq.T
    k = x @ wk.T
    v = x @ wv.T
    q = q.reshape(B, T, num_heads, hd).transpose(0, 2, 1, 3)
    k = k.reshape(B, T, num_heads, hd).transpose(0, 2, 1, 3)
    v = v.reshape(B, T, num_heads, hd).transpose(0, 2, 1, 3)
    s = jnp.einsum('bhqd,bhkd->bhqk', q, k)
    mask = jnp.triu(jnp.ones((T, T), dtype=bool), k=1)
    s = jnp.where(mask[None, None], -jnp.inf, s)
    w = jax.nn.softmax(s / (hd ** 0.5), axis=-1)
    ctx = jnp.einsum('bhqk,bhkd->bhqd', w, v).transpose(0, 2, 1, 3).reshape(B, T, d_out)
    return ctx @ wo.T + bo


if __name__ == "__main__":
    # Small shapes consistent with the module's forward pass.
    batch, seq, d_in, d_out, num_heads = 2, 8, 32, 32, 4

    key = jax.random.PRNGKey(0)
    kx, kq, kk, kv, ko, kb = jax.random.split(key, 6)

    x = jax.random.normal(kx, (batch, seq, d_in), dtype=jnp.float32)
    wq = jax.random.normal(kq, (d_out, d_in), dtype=jnp.float32) * 0.1
    wk = jax.random.normal(kk, (d_out, d_in), dtype=jnp.float32) * 0.1
    wv = jax.random.normal(kv, (d_out, d_in), dtype=jnp.float32) * 0.1
    wo = jax.random.normal(ko, (d_out, d_out), dtype=jnp.float32) * 0.1
    bo = jax.random.normal(kb, (d_out,), dtype=jnp.float32) * 0.1

    out = mha_forward(x, wq, wk, wv, wo, bo, num_heads=num_heads)
    out = jax.block_until_ready(out)

    ref = mha_reference(x, wq, wk, wv, wo, bo, num_heads=num_heads)
    assert out.shape == (batch, seq, d_out)
    # Tolerance allows for the approximate (EUP) reciprocal in the softmax.
    assert jnp.allclose(out, ref, atol=2e-3, rtol=2e-3), "mismatch vs. reference"

    print("KERNEL_OK")
</pallas_src>

<mosaic_0001>
module attributes {stable_mosaic.version = 11 : i64} {
  func.func @_mha_kernel(%arg0: i32, %arg1: i32, %arg2: memref<2x8x32xf32, #tpu.memory_space<vmem>>, %arg3: memref<1x32x8xf32, #tpu.memory_space<vmem>>, %arg4: memref<1x32x8xf32, #tpu.memory_space<vmem>>, %arg5: memref<1x32x8xf32, #tpu.memory_space<vmem>>, %arg6: memref<1x8x32xf32, #tpu.memory_space<vmem>>, %arg7: memref<1x32xf32, #tpu.memory_space<vmem>>, %arg8: memref<2x8x32xf32, #tpu.memory_space<vmem>>, %arg9: memref<2x8x32xf32, #tpu.memory_space<vmem>>) attributes {dimension_semantics = [#tpu.dimension_semantics<parallel>, #tpu.dimension_semantics<arbitrary>], iteration_bounds = array<i64: 1, 4>, scalar_prefetch = 0 : i64, scratch_operands = 1 : i64, tpu.core_type = #tpu.core_type<tc>, window_params = [{transform_indices = @transform_0, window_bounds = array<i64: 2, 8, 32>}, {transform_indices = @transform_1, window_bounds = array<i64: 1, 32, 8>}, {transform_indices = @transform_2, window_bounds = array<i64: 1, 32, 8>}, {transform_indices = @transform_3, window_bounds = array<i64: 1, 32, 8>}, {transform_indices = @transform_4, window_bounds = array<i64: 1, 8, 32>}, {pipeline_mode = #tpu.pipeline_mode<synchronous>, transform_indices = @transform_5, window_bounds = array<i64: 1, 32>}, {transform_indices = @transform_6, window_bounds = array<i64: 2, 8, 32>}]} {
    %c0 = arith.constant 0 : index
    %c0_0 = arith.constant 0 : index
    %c0_1 = arith.constant 0 : index
    %0 = vector.load %arg2[%c0, %c0_0, %c0_1] : memref<2x8x32xf32, #tpu.memory_space<vmem>>, vector<2x8x32xf32>
    %1 = vector.shape_cast %0 : vector<2x8x32xf32> to vector<16x32xf32>
    %c0_2 = arith.constant 0 : index
    %c0_3 = arith.constant 0 : index
    %c0_4 = arith.constant 0 : index
    %2 = vector.load %arg3[%c0_2, %c0_3, %c0_4] : memref<1x32x8xf32, #tpu.memory_space<vmem>>, vector<1x32x8xf32>
    %3 = vector.shape_cast %2 : vector<1x32x8xf32> to vector<32x8xf32>
    %cst = arith.constant dense<0.000000e+00> : vector<16x8xf32>
    %4 = tpu.matmul %1, %3, %cst {dimension_numbers = #tpu.dot_dimension_numbers<[1], [0], [0], [1], [0, 0, 1, 1], [], []>} : vector<16x32xf32>, vector<32x8xf32>, vector<16x8xf32> -> vector<16x8xf32>
    %5 = vector.shape_cast %4 : vector<16x8xf32> to vector<2x8x8xf32>
    %c0_5 = arith.constant 0 : index
    %c0_6 = arith.constant 0 : index
    %c0_7 = arith.constant 0 : index
    %6 = vector.load %arg4[%c0_5, %c0_6, %c0_7] : memref<1x32x8xf32, #tpu.memory_space<vmem>>, vector<1x32x8xf32>
    %7 = vector.shape_cast %6 : vector<1x32x8xf32> to vector<32x8xf32>
    %cst_8 = arith.constant dense<0.000000e+00> : vector<16x8xf32>
    %8 = tpu.matmul %1, %7, %cst_8 {dimension_numbers = #tpu.dot_dimension_numbers<[1], [0], [0], [1], [0, 0, 1, 1], [], []>} : vector<16x32xf32>, vector<32x8xf32>, vector<16x8xf32> -> vector<16x8xf32>
    %9 = vector.shape_cast %8 : vector<16x8xf32> to vector<2x8x8xf32>
    %c0_9 = arith.constant 0 : index
    %c0_10 = arith.constant 0 : index
    %c0_11 = arith.constant 0 : index
    %10 = vector.load %arg5[%c0_9, %c0_10, %c0_11] : memref<1x32x8xf32, #tpu.memory_space<vmem>>, vector<1x32x8xf32>
    %11 = vector.shape_cast %10 : vector<1x32x8xf32> to vector<32x8xf32>
    %cst_12 = arith.constant dense<0.000000e+00> : vector<16x8xf32>
    %12 = tpu.matmul %1, %11, %cst_12 {dimension_numbers = #tpu.dot_dimension_numbers<[1], [0], [0], [1], [0, 0, 1, 1], [], []>} : vector<16x32xf32>, vector<32x8xf32>, vector<16x8xf32> -> vector<16x8xf32>
    %13 = vector.shape_cast %12 : vector<16x8xf32> to vector<2x8x8xf32>
    "tpu.trace_start"() <{level = 10 : i32, message = "bqd,bkd->bqk"}> : () -> ()
    %cst_13 = arith.constant dense<0.000000e+00> : vector<2x8x8xf32>
    %14 = tpu.matmul %5, %9, %cst_13 {dimension_numbers = #tpu.dot_dimension_numbers<[2], [2], [1], [1], [0, 0, 0, 1, 1, 1], [0], [0]>} : vector<2x8x8xf32>, vector<2x8x8xf32>, vector<2x8x8xf32> -> vector<2x8x8xf32>
    "tpu.trace_stop"() : () -> ()
    %15 = tpu.iota {dimensions = array<i32: 1>} : vector<2x8x8xi32>
    %16 = tpu.iota {dimensions = array<i32: 2>} : vector<2x8x8xi32>
    %17 = arith.cmpi sle, %16, %15 : vector<2x8x8xi32>
    %cst_14 = arith.constant 0xFF800000 : f32
    %18 = vector.broadcast %cst_14 : f32 to vector<2x8x8xf32>
    %19 = arith.select %17, %14, %18 : vector<2x8x8xi1>, vector<2x8x8xf32>
    %cst_15 = arith.constant dense<0xFF800000> : vector<2x8xf32>
    %20 = vector.multi_reduction <maximumf>, %19, %cst_15 [2] : vector<2x8x8xf32> to vector<2x8xf32>
    %21 = vector.shape_cast %20 : vector<2x8xf32> to vector<2x8x1xf32>
    %22 = vector.broadcast %21 : vector<2x8x1xf32> to vector<2x8x8xf32>
    %23 = arith.subf %19, %22 : vector<2x8x8xf32>
    %24 = math.exp %23 : vector<2x8x8xf32>
    %cst_16 = arith.constant dense<0.000000e+00> : vector<2x8xf32>
    %25 = vector.multi_reduction <add>, %24, %cst_16 [2] : vector<2x8x8xf32> to vector<2x8xf32>
    %26 = vector.shape_cast %25 : vector<2x8xf32> to vector<2x8x1xf32>
    %27 = tpu.reciprocal %26 {approx = true} : vector<2x8x1xf32> -> vector<2x8x1xf32>
    %28 = vector.broadcast %27 : vector<2x8x1xf32> to vector<2x8x8xf32>
    %29 = arith.mulf %24, %28 : vector<2x8x8xf32>
    "tpu.trace_start"() <{level = 10 : i32, message = "bqk,bkd->bqd"}> : () -> ()
    %cst_17 = arith.constant dense<0.000000e+00> : vector<2x8x8xf32>
    %30 = tpu.matmul %29, %13, %cst_17 {dimension_numbers = #tpu.dot_dimension_numbers<[2], [1], [1], [2], [0, 0, 0, 1, 1, 2], [0], [0]>} : vector<2x8x8xf32>, vector<2x8x8xf32>, vector<2x8x8xf32> -> vector<2x8x8xf32>
    "tpu.trace_stop"() : () -> ()
    %31 = vector.shape_cast %30 : vector<2x8x8xf32> to vector<16x8xf32>
    %c0_18 = arith.constant 0 : index
    %c0_19 = arith.constant 0 : index
    %c0_20 = arith.constant 0 : index
    %32 = vector.load %arg6[%c0_18, %c0_19, %c0_20] : memref<1x8x32xf32, #tpu.memory_space<vmem>>, vector<1x8x32xf32>
    %33 = vector.shape_cast %32 : vector<1x8x32xf32> to vector<8x32xf32>
    %cst_21 = arith.constant dense<0.000000e+00> : vector<16x32xf32>
    %34 = tpu.matmul %31, %33, %cst_21 {dimension_numbers = #tpu.dot_dimension_numbers<[1], [0], [0], [1], [0, 0, 1, 1], [], []>} : vector<16x8xf32>, vector<8x32xf32>, vector<16x32xf32> -> vector<16x32xf32>
    %35 = vector.shape_cast %34 : vector<16x32xf32> to vector<2x8x32xf32>
    %c0_i32 = arith.constant 0 : i32
    %36 = arith.cmpi eq, %arg1, %c0_i32 : i32
    %37 = arith.extui %36 : i1 to i32
    %c0_i32_22 = arith.constant 0 : i32
    %38 = arith.cmpi ne, %37, %c0_i32_22 : i32
    scf.if %38 {
      %cst_30 = arith.constant 0.000000e+00 : f32
      %45 = vector.broadcast %cst_30 : f32 to vector<2x8x32xf32>
      %c0_31 = arith.constant 0 : index
      %c0_32 = arith.constant 0 : index
      %c0_33 = arith.constant 0 : index
      %46 = vector.load %arg9[%c0_31, %c0_32, %c0_33] : memref<2x8x32xf32, #tpu.memory_space<vmem>>, vector<2x8x32xf32>
      tpu.vector_store %arg9[%c0_31, %c0_32, %c0_33], %45 {strides = array<i32>} : memref<2x8x32xf32, #tpu.memory_space<vmem>>, vector<2x8x32xf32>,
    } else {
    }
    %c0_23 = arith.constant 0 : index
    %c0_24 = arith.constant 0 : index
    %c0_25 = arith.constant 0 : index
    %39 = vector.load %arg9[%c0_23, %c0_24, %c0_25] : memref<2x8x32xf32, #tpu.memory_space<vmem>>, vector<2x8x32xf32>
    %40 = arith.addf %39, %35 : vector<2x8x32xf32>
    %c0_26 = arith.constant 0 : index
    %c0_27 = arith.constant 0 : index
    %c0_28 = arith.constant 0 : index
    %41 = vector.load %arg9[%c0_26, %c0_27, %c0_28] : memref<2x8x32xf32, #tpu.memory_space<vmem>>, vector<2x8x32xf32>
    tpu.vector_store %arg9[%c0_26, %c0_27, %c0_28], %40 {strides = array<i32>} : memref<2x8x32xf32, #tpu.memory_space<vmem>>, vector<2x8x32xf32>,
    %c3_i32 = arith.constant 3 : i32
    %42 = arith.cmpi eq, %arg1, %c3_i32 : i32
    %43 = arith.extui %42 : i1 to i32
    %c0_i32_29 = arith.constant 0 : i32
    %44 = arith.cmpi ne, %43, %c0_i32_29 : i32
    scf.if %44 {
      %c0_30 = arith.constant 0 : index
      %c0_31 = arith.constant 0 : index
      %c0_32 = arith.constant 0 : index
      %45 = vector.load %arg9[%c0_30, %c0_31, %c0_32] : memref<2x8x32xf32, #tpu.memory_space<vmem>>, vector<2x8x32xf32>
      %c0_33 = arith.constant 0 : index
      %c0_34 = arith.constant 0 : index
      %46 = vector.load %arg7[%c0_33, %c0_34] : memref<1x32xf32, #tpu.memory_space<vmem>>, vector<1x32xf32>
      %47 = vector.shape_cast %46 : vector<1x32xf32> to vector<1x1x32xf32>
      %48 = vector.broadcast %47 : vector<1x1x32xf32> to vector<2x8x32xf32>
      %49 = arith.addf %45, %48 : vector<2x8x32xf32>
      %c0_35 = arith.constant 0 : index
      %c0_36 = arith.constant 0 : index
      %c0_37 = arith.constant 0 : index
      %50 = vector.load %arg8[%c0_35, %c0_36, %c0_37] : memref<2x8x32xf32, #tpu.memory_space<vmem>>, vector<2x8x32xf32>
      tpu.vector_store %arg8[%c0_35, %c0_36, %c0_37], %49 {strides = array<i32>} : memref<2x8x32xf32, #tpu.memory_space<vmem>>, vector<2x8x32xf32>,
    } else {
    }
    return
  }
  func.func @transform_0(%arg0: i32, %arg1: i32) -> (i32, i32, i32) {
    %c0_i32 = arith.constant 0 : i32
    %c0_i32_0 = arith.constant 0 : i32
    %c0_i32_1 = arith.constant 0 : i32
    return %arg0, %c0_i32, %c0_i32_0 : i32, i32, i32
  }
  func.func @transform_1(%arg0: i32, %arg1: i32) -> (i32, i32, i32) {
    %c0_i32 = arith.constant 0 : i32
    %c0_i32_0 = arith.constant 0 : i32
    %c0_i32_1 = arith.constant 0 : i32
    return %arg1, %c0_i32, %c0_i32_0 : i32, i32, i32
  }
  func.func @transform_2(%arg0: i32, %arg1: i32) -> (i32, i32, i32) {
    %c0_i32 = arith.constant 0 : i32
    %c0_i32_0 = arith.constant 0 : i32
    %c0_i32_1 = arith.constant 0 : i32
    return %arg1, %c0_i32, %c0_i32_0 : i32, i32, i32
  }
  func.func @transform_3(%arg0: i32, %arg1: i32) -> (i32, i32, i32) {
    %c0_i32 = arith.constant 0 : i32
    %c0_i32_0 = arith.constant 0 : i32
    %c0_i32_1 = arith.constant 0 : i32
    return %arg1, %c0_i32, %c0_i32_0 : i32, i32, i32
  }
  func.func @transform_4(%arg0: i32, %arg1: i32) -> (i32, i32, i32) {
    %c0_i32 = arith.constant 0 : i32
    %c0_i32_0 = arith.constant 0 : i32
    %c0_i32_1 = arith.constant 0 : i32
    return %arg1, %c0_i32, %c0_i32_0 : i32, i32, i32
  }
  func.func @transform_5(%arg0: i32, %arg1: i32) -> (i32, i32) {
    %c0_i32 = arith.constant 0 : i32
    %c0_i32_0 = arith.constant 0 : i32
    %c0_i32_1 = arith.constant 0 : i32
    return %c0_i32, %c0_i32_0 : i32, i32
  }
  func.func @transform_6(%arg0: i32, %arg1: i32) -> (i32, i32, i32) {
    %c0_i32 = arith.constant 0 : i32
    %c0_i32_0 = arith.constant 0 : i32
    %c0_i32_1 = arith.constant 0 : i32
    return %arg0, %c0_i32, %c0_i32_0 : i32, i32, i32
  }
}

</mosaic_0001>

<bundles_post_ra>
// kernel: tpu_custom_call.1
= control target key start
LH: loop header
LB: loop body
LE: loop exit
PB: predicated region body
PF: predicated region fallthrough
CT: control target
= control target key end

     0   :  { %11 = vsyncpa [#allocation4], 0  ;;  %s1393_s21 = smov 0   ;;  %s1395_s22 = smov 0   ;;  %s1502_s0 = inlined_call_operand.vmem [shape: f32[2,8,32], index: 0, kind: input, shape index: {}]   ;;  %s1503_s1 = inlined_call_operand.vmem [shape: f32[4,32,8], index: 1, kind: input, shape index: {}]   ;;  %s1504_s2 = inlined_call_operand.vmem [shape: f32[4,32,8], index: 2, kind: input, shape index: {}]   ;;  %s1505_s3 = inlined_call_operand.vmem [shape: f32[4,32,8], index: 3, kind: input, shape index: {}]   ;;  %s1506_s4 = inlined_call_operand.vmem [shape: f32[4,8,32], index: 4, kind: input, shape index: {}]   ;;  %s1507_s5 = inlined_call_operand.vmem [shape: f32[1,32], index: 5, kind: input, shape index: {}]   ;;  %s1508_s6 = inlined_call_operand.hbm [shape: f32[2,8,32], index: 6, kind: output, shape index: {}]  }
   0x1   :  { %s1397_s23 = smov 0  }
   0x2 LB: > { %s1133_s24 = sadd.s32 4294967295, %s1350_s23   ;;  %s26_s25 = sadd.s32 1, %s1346_s22  ;;  %s1350_s23 = sphi %s1397_s23, %s17_s23   ;;  %s1346_s22 = sphi %s1395_s22, %s1511_s22   ;;  %s1342_s21 = sphi %s1393_s21, %s1510_s21  }
   0x3   : > { %p27_p0 = scmp.ge.s32.totalorder %s26_s25, 4  ;;  %p1137_p1 = scmp.ge.s32.totalorder %s1350_s23, 1 }
   0x4   : > { %p265_p2 = scmp.lt.s32.totalorder %s1350_s23, 5 }
   0x5   : > { %s1513_s25 = smov (%p27_p0, %s26_s25), 0 }
   0x6   : > { %p266_p3 = pnand %p1137_p1, %p265_p2 }
   0x7   : > { %p315_p4 = scmp.lt.s32.totalorder (!%p266_p3), %s1342_s21, 3  ;;  %p1159_p5 = scmp.ne.s32.totalorder (!%p266_p3), %s1342_s21, 0 }
   0x8   : > { %269 = sbr.rel (%p266_p3) target bundleno = 1160 (0x488), region = 44 }
   0xd   : > { %v335_v0 = vld [vmem:[%s1502_s0] sm:$0xff]  ;;  %vm341_vm0 = vcmask 261120   ;;  %s1421_s28 = scalar_select %p315_p4, %s1342_s21, 3  ;;  %v336_v9 = vld [vmem:[%s1502_s0 + $0x8] sm:$0xff]  ;;  %v1352_v10 = vmov 0.0   ;;  %vm1353_vm1 = vmmov 0   ;;  %v734_v19 = vlaneseq }
   0xe   : > { %1217 = vmatprep.mubr.msk.f32.mxu1 %vm341_vm0, %v335_v0  ;;  %1206 = vmatprep.mubr.msk.f32.mxu0 %vm341_vm0, %v335_v0  ;;  %vm581_vm2 = vcmask 64512  }
   0xf   : > { %s1424_s29 = sshll.u32 %s1421_s28, 5  ;;  %v735_v20 = vshrl.u32 %v734_v19, 7  ;;  %v737_v21 = vand.u32 127, %v734_v19  ;;  %s1144_s17 = sshll.u32 %s1421_s28, 3 }
  0x10   : > { %s324_s8 = scalar_lea.vmem %s1504_s2, %s1424_s29  ;;  %s319_s11 = scalar_lea.vmem %s1503_s1, %s1424_s29 }
  0x11   : > { %v426_v1 = vld [vmem:[%s324_s8 + $0x18] sm:$0xff]  ;;  %v425_v3 = vld [vmem:[%s324_s8 + $0x10] sm:$0xff]  ;;  %v424_v5 = vld [vmem:[%s324_s8 + $0x8] sm:$0xff]  ;;  %s329_s16 = scalar_lea.vmem %s1505_s3, %s1424_s29  ;;  %vm738_vm3 = vcmp.le.s32.totalorder %v737_v21, %v735_v20  ;;  %s333_s20 = scalar_lea.vmem %s1506_s4, %s1144_s17 }
  0x12   : > { %v340_v2 = vld [vmem:[%s319_s11 + $0x18] sm:$0xff]  ;;  %1209 = vmatprep.subr.mxu1 %v426_v1  ;;  %v339_v4 = vld [vmem:[%s319_s11 + $0x10] sm:$0xff]  ;;  %v338_v6 = vld [vmem:[%s319_s11 + $0x8] sm:$0xff] }
  0x13   : > { %1198 = vmatprep.subr.mxu0 %v340_v2  ;;  %1210 = vmatpush3.msra.mxu1 %v426_v1  ;;  %v423_v7 = vld [vmem:[%s324_s8] sm:$0xff]  ;;  %v505_v15 = vld [vmem:[%s329_s16 + $0x18] sm:$0xff]  ;;  %v504_v16 = vld [vmem:[%s329_s16 + $0x10] sm:$0xff] }
  0x14   : > { %1199 = vmatpush3.msra.mxu0 %v340_v2  ;;  %1211 = vmatprep.subr.mxu1 %v425_v3  ;;  %v337_v8 = vld [vmem:[%s319_s11] sm:$0xff]  ;;  %v503_v17 = vld [vmem:[%s329_s16 + $0x8] sm:$0xff] }
  0x15   : > { %1200 = vmatprep.subr.mxu0 %v339_v4  ;;  %1212 = vmatpush3.msra.mxu1 %v425_v3  ;;  %v502_v18 = vld [vmem:[%s329_s16] sm:$0xff] }
  0x16   : > { %1201 = vmatpush3.msra.mxu0 %v339_v4  ;;  %1213 = vmatprep.subr.mxu1 %v424_v5  ;;  %v909_v48 = vld [vmem:[%s333_s20] sm:$0xff] }
  0x17   : > { %1202 = vmatprep.subr.mxu0 %v338_v6  ;;  %1214 = vmatpush3.msra.mxu1 %v424_v5 }
  0x18   : > { %1203 = vmatpush3.msra.mxu0 %v338_v6  ;;  %1215 = vmatprep.subr.mxu1 %v423_v7 }
  0x19   : > { %1204 = vmatprep.subr.mxu0 %v337_v8  ;;  %1216 = vmatpush3.msra.mxu1 %v423_v7 }
  0x1a   : > { %1205 = vmatpush3.msra.mxu0 %v337_v8  ;;  %1218 = vmatmul.mubr.msk.f32.vlgmr.msra.gmra.mxu1 %vm341_vm0, %v336_v9 }
  0x1b   : > { %1207 = vmatmul.mubr.msk.f32.vlgmr.msra.gmra.mxu0 %vm341_vm0, %v336_v9  ;;  %1231 = vmatprep.subr.mxu1 %v1352_v10 }
  0x1c   : > { %1228 = vmatprep.mubr.msk.f32.mxu0 %vm341_vm0, %v335_v0  ;;  %1233 = vmatprep.mubr.msk.f32.mxu1 %vm1353_vm1, %v1352_v10 }
  0x1d   : > { %1220 = vmatprep.subr.mxu0 %v505_v15 }
  0x1e   : > { %1221 = vmatpush3.msra.mxu0 %v505_v15 }
  0x1f   : > { %1222 = vmatprep.subr.mxu0 %v504_v16 }
  0x20   : > { %1223 = vmatpush3.msra.mxu0 %v504_v16 }
  0x21   : > { %1224 = vmatprep.subr.mxu0 %v503_v17 }
  0x22   : > { %1225 = vmatpush3.msra.mxu0 %v503_v17 }
  0x23   : > { %1226 = vmatprep.subr.mxu0 %v502_v18 }
  0x24   : > { %1227 = vmatpush3.msra.mxu0 %v502_v18 }
  0x25   : > { %1229 = vmatmul.mubr.msk.f32.vlgmr.msra.gmra.mxu0 %vm341_vm0, %v336_v9  ;;  %1241 = vmatprep.subr.mxu0 %v1352_v10 }
  0x26   : > { %1243 = vmatprep.mubr.msk.f32.mxu0 %vm1353_vm1, %v1352_v10 }
  0xda   : > { %v1219_v11 = vpop.f32.mrf.mxu1 }
  0xdb   : > { %v1208_v12 = vpop.f32.mrf.mxu0 }
  0xdc   : > { %v493_v13 = vpop.f32.mrf.mxu1 }
  0xdd   : > { %1232 = vmatpush3.xpose.msk.msra.mxu1 %vm581_vm2, %v493_v13  ;;  %v414_v14 = vpop.f32.mrf.mxu0 }
  0xde   : > { %1236 = vmatprep.subr.mxu1 %v1352_v10 }
  0xe0   : > { %1234 = vmatmul.mubr.msk.f32.vlgmr.msra.gmra.mxu1 %vm581_vm2, %v414_v14 }
  0xe1   : > { %1237 = vmatpush3.xpose.msk.msra.mxu1 %vm581_vm2, %v1219_v11  ;;  %1238 = vmatprep.mubr.msk.f32.mxu1 %vm1353_vm1, %v1352_v10 }
  0xe2   : > { %1246 = vmatprep.subr.mxu1 %v1352_v10 }
  0xe4   : > { %1239 = vmatmul.mubr.msk.f32.vlgmr.msra.gmra.mxu1 %vm581_vm2, %v1208_v12 }
  0xe5   : > { %1248 = vmatprep.mubr.msk.f32.mxu1 %vm1353_vm1, %v1352_v10  ;;  %v1230_v40 = vpop.f32.mrf.mxu0 }
  0xe6   : > { %1247 = vmatpush3.msra.mxu1 %v1230_v40 }
  0xe7   : > { %v572_v41 = vpop.f32.mrf.mxu0 }
  0xe8   : > { %1242 = vmatpush3.msra.mxu0 %v572_v41 }
  0xe9   : > { %1251 = vmatprep.subr.mxu0 %v909_v48 }
 0x1a0   : > { %v654_v22 = vpop.f32.mrf.mxu1 }
 0x1a1   : > { %v739_v23 = vsel %vm738_vm3, %v654_v22, -inf }
 0x1a2   : > { %v1235_v24 = vpop.f32.mrf.mxu1  ;;  %v741_v25 = vsel %vm581_vm2, %v739_v23, -inf }
 0x1a3   : > { %742 = vmax.xlane.f32.xlu0 %v741_v25 }
 0x1a4   : > { %v730_v26 = vpop.f32.mrf.mxu1 }
 0x1a5   : > { %v740_v27 = vsel %vm738_vm3, %v730_v26, -inf }
 0x1a6   : > { %v1240_v28 = vpop.f32.mrf.mxu1  ;;  %v744_v29 = vsel %vm581_vm2, %v740_v27, -inf }
 0x1a7   : > { %745 = vmax.xlane.f32.xlu0 %v744_v29 }
 0x22c   : > { %v743_v30 = vpop.xlane.xlu0 %742 }
 0x22d   : > { %v747_v31 = vsub.f32 %v739_v23, %v743_v30 }
 0x22f   : > { %v749_v32 = vmul.f32 1.442695, %v747_v31 }
 0x230   : > { %v746_v33 = vpop.xlane.xlu0 %745 }
 0x231   : > { %1292 = vpow2.f32 %v749_v32  ;;  %v748_v34 = vsub.f32 %v740_v27, %v746_v33 }
 0x233   : > { %v751_v35 = vmul.f32 1.442695, %v748_v34 }
 0x235   : > { %1294 = vpow2.f32 %v751_v35 }
 0x23e   : > { %v1293_v36 = vpop.eup %1292 }
 0x23f   : > { %v753_v37 = vsel %vm581_vm2, %v1293_v36, 0.0 }
 0x240   : > { %754 = vadd.xlane.f32.xlu1 %v753_v37 }
 0x242   : > { %v1295_v38 = vpop.eup %1294 }
 0x243   : > { %v756_v39 = vsel %vm581_vm2, %v1295_v38, 0.0 }
 0x244   : > { %757 = vadd.xlane.f32.xlu1 %v756_v39 }
 0x2c9   : > { %v755_v42 = vpop.xlane.xlu1 %754 }
 0x2ca   : > { %1296 = vrcp.f32 %v755_v42 }
 0x2cd   : > { %v758_v43 = vpop.xlane.xlu1 %757 }
 0x2ce   : > { %1298 = vrcp.f32 %v758_v43 }
 0x2d7   : > { %v1297_v44 = vpop.eup %1296 }
 0x2d8   : > { %v761_v45 = vmul.f32 %v1297_v44, %v1293_v36 }
 0x2da   : > { %1244 = vmatmul.mubr.msk.f32.vlgmr.msra.gmra.mxu0 %vm581_vm2, %v761_v45 }
 0x2db   : > { %v1299_v46 = vpop.eup %1298  ;;  %1252 = vmatpush3.msra.mxu0 %v909_v48 }
 0x2dc   : > { %v762_v47 = vmul.f32 %v1299_v46, %v1295_v38 }
 0x2de   : > { %1249 = vmatmul.mubr.msk.f32.vlgmr.msra.gmra.mxu1 %vm581_vm2, %v762_v47 }
 0x39a   : > { %v832_v49 = vpop.f32.mrf.mxu0 }
 0x39b   : > { %1253 = vmatprep.mubr.msk.f32.mxu0 %vm581_vm2, %v832_v49 }
 0x39c   : > { %v1245_v50 = vpop.f32.mrf.mxu0 }
 0x39e   : > { %v905_v51 = vpop.f32.mrf.mxu1 }
 0x39f   : > { %1254 = vmatmul.mubr.msk.f32.vlgmr.msra.gmra.mxu0 %vm581_vm2, %v905_v51 }
 0x3a0   : > { %v1250_v52 = vpop.f32.mrf.mxu1 }
 0x45d   : > { %994 = sbr.rel (%p1159_p5) target bundleno = 1124 (0x464), region = 48 }
 0x45f   : > { %v1255_v53 = vpop.f32.mrf.mxu0 }
 0x461   : > { %v982_v54 = vpop.f32.mrf.mxu0 }
 0x462   : > { %v1354_v55 = vmov 0.0  }
 0x463   : > { %995 = vst.msk [vmem:[#allocation2] sm:$0xff] %vm341_vm0, %v1354_v55  ;;  %996 = vst.msk [vmem:[#allocation2 + $0x8] sm:$0xff] %vm341_vm0, %v1354_v55 }
 0x464 PF: > { %p1160_p6 = scmp.ne.s32.totalorder %s1342_s21, 3 }
 0x469   : > { %1006 = sbr.rel (%p1160_p6) target bundleno = 1144 (0x478), region = 52 }
 0x46a   : > { %v997_v56 = vld [vmem:[#allocation2] sm:$0xff]  ;;  %v998_v57 = vld [vmem:[#allocation2 + $0x8] sm:$0xff] }
 0x46b   : > { %v999_v58 = vadd.f32 %v997_v56, %v982_v54  ;;  %v1000_v59 = vadd.f32 %v1255_v53, %v998_v57 }
 0x46d   : > { %1001 = vst.msk [vmem:[#allocation2] sm:$0xff] %vm341_vm0, %v999_v58  ;;  %1002 = vst.msk [vmem:[#allocation2 + $0x8] sm:$0xff] %vm341_vm0, %v1000_v59 }
 0x46e   : > { %v1161_v61 = vld [vmem:[%s1507_s5] ss:$0 sm:$0xff] }
 0x474   : > { %v1007_v60 = vld [vmem:[#allocation2] sm:$0xff]  ;;  %v1008_v62 = vld [vmem:[#allocation2 + $0x8] sm:$0xff] }
 0x475   : > { %v1016_v63 = vadd.f32 %v1161_v61, %v1007_v60  ;;  %v1017_v0 = vadd.f32 %v1161_v61, %v1008_v62 }
 0x477   : > { %1018 = vst.msk [vmem:[#allocation3] sm:$0xff] %vm341_vm0, %v1016_v63  ;;  %1019 = vst.msk [vmem:[#allocation3 + $0x8] sm:$0xff] %vm341_vm0, %v1017_v0 }
 0x478 PF: > { %p1478_p7 = scmp.eq.s32.totalorder %s1133_s24, 3  ;;  %s1355_s21 = smov [#allocation3]  }
 0x479   : > { %s1029_s29 = sshll.u32 %s1355_s21, 4  ;;  %s1030_s29 = int_to_ptr.vmem [resolvable:$true] %s1029_s29 }
 0x47a   : > { %s1300_s30 = scalar_lea.vmem %s1030_s29, 256  ;;  %p1307_p11 = scmp.lt.s32.totalorder %s1030_s29, %s1030_s29 }
 0x47b   : > { %p1301_p8 = scmp.ne.s32.totalorder %s1030_s29, %s1300_s30  ;;  %p1308_p12 = scmp.lt.s32.totalorder %s1300_s30, %s1300_s30 }
 0x47d   : > { %p1302_p9 = pnand %p1301_p8, %p1478_p7  ;;  %p1309_p13 = por %p1308_p12, %p1307_p11 }
 0x47f   : > { %p1303_p10 = pneg %p1302_p9 }
 0x481   : > { %p1310_p0 = pnand %p1309_p13, %p1303_p10 }
 0x483   : > { %1313 = shalt.err (!%p1310_p0)
}
 0x484   : > { %s1356_s7 = smov 128   ;;  %s1357_s24 = smov 8  }
 0x485   : > { %1257 = dma.vmem_to_hbm [thread:$0]  (%p1478_p7), %s1030_s29, 256, %s1508_s6, [#allocation4], %s1356_s7, %s1356_s7, %s1357_s24  }
 0x486   : > { %1337 = dma.done.wait (%p1478_p7), [#allocation4], 256  }
 0x487   : > { %1339 = vsyncadd (%p1478_p7), [#allocation4], 4294967040 }
 0x488 PF: > { %s17_s23 = sadd.s32 1, %s1350_s23   ;;  %s1510_s21 = smov %s1346_s22 }
 0x489   : > { %p14_p1 = scmp.ge.s32.totalorder %s17_s23, 6   ;;  %s1511_s22 = smov %s1513_s25 }
 0x48b   :  { %16 = sbr.rel (!%p14_p1) target bundleno = 2 (0x2), region = 92 }
 0x490   :  { %1045 = vsyncpa [#allocation4], 1 }
 0x491   :  { %1047 = vsyncpa [#allocation4 + $0x1], 1 }

</bundles_post_ra>
